<compile_context>
chip_gen: v7x
topology: tpu7x:2x2x1
jax: 0.10.0
libtpu: 0.0.40
codegen_flags: <defaults>
</compile_context>

<pallas_src>
import functools

import jax
import jax.numpy as jnp
import numpy as np
from jax.experimental import pallas as pl
from jax.experimental.pallas import tpu as pltpu

_MiB = 1024 * 1024


def _round_up(x, m):
    return ((x + m - 1) // m) * m


def _tpu_generation():
    """(physical_vmem_bytes, tensorcores_per_chip) with conservative fallbacks."""
    kind = ""
    try:
        kind = jax.devices()[0].device_kind.lower()
    except Exception:
        pass
    vmem = None
    try:
        vmem = int(pltpu.get_tpu_info().vmem_capacity_bytes)
    except Exception:
        vmem = None
    if vmem is None:
        vmem = 64 * _MiB if "v7" in kind else 128 * _MiB
    cores = 2 if "v7" in kind else 1
    return vmem, cores


def _afmse_kernel(y_ref, p_ref, d_ref, num_ref, cnt_ref,
                  ss_acc, nd_acc, sy_acc, sy2_acc, nm_acc=None, *,
                  binary, n_chunks):
    # grid = (row_tiles, gene_tiles); gene axis is the reduction ("arbitrary") axis.
    k = pl.program_id(1)

    @pl.when(k == 0)
    def _():
        ss_acc[...] = jnp.zeros_like(ss_acc)
        nd_acc[...] = jnp.zeros_like(nd_acc)
        sy_acc[...] = jnp.zeros_like(sy_acc)
        sy2_acc[...] = jnp.zeros_like(sy2_acc)
        if not binary:
            nm_acc[...] = jnp.zeros_like(nm_acc)

    # Fused 128-lane chunk loop: every intermediate stays (tb, 128); no (tb, tg)
    # temporaries are materialized.  Static slices -> aligned vector loads.
    for c in range(n_chunks):
        sl = slice(c * 128, (c + 1) * 128)
        y = y_ref[:, sl].astype(jnp.float32)
        p = p_ref[:, sl].astype(jnp.float32)
        d = d_ref[:, sl].astype(jnp.float32)   # degs may arrive narrow (int8/bf16)

        yd = y * d
        diff = yd - p * d                      # == degs*y - degs*pred, as in the module
        ss_acc[...] += diff * diff             # masked squared error
        nd_acc[...] += d                       # sum of degs (mse denominator)
        if binary:
            ym = yd                            # 0/1 degs: selection mask == degs
        else:
            m = (d != 0.0).astype(jnp.float32)
            nm_acc[...] += m                   # number of DE genes (variance count)
            ym = y * m
        sy_acc[...] += ym                      # sum of selected y
        sy2_acc[...] += ym * y                 # sum of selected y^2

    @pl.when(k == pl.num_programs(1) - 1)
    def _():
        # Cross-lane (XLU) reductions + per-row scalar math happen once per row tile.
        ss = jnp.sum(ss_acc[...], axis=1, keepdims=True)    # (tb, 1)
        nd = jnp.sum(nd_acc[...], axis=1, keepdims=True)
        sy = jnp.sum(sy_acc[...], axis=1, keepdims=True)
        sy2 = jnp.sum(sy2_acc[...], axis=1, keepdims=True)
        nm = nd if binary else jnp.sum(nm_acc[...], axis=1, keepdims=True)

        treated = (nd != 0.0).astype(jnp.float32)
        mse = ss / (nd + 1e-6)
        # One-pass unbiased variance of the selected y values (matches torch .var
        # with the n-1 denom).  Note: single-pass in f32 can lose precision when
        # |mean| >> std; clamped so cancellation can't flip the sign.
        mean = sy / jnp.maximum(nm, 1.0)
        var = (sy2 - nm * mean * mean) / jnp.maximum(nm - 1.0, 1.0)
        var = jnp.maximum(var, 1e-30)
        w = jnp.where(treated > 0.0, jnp.clip(1.0 / var, 0.3, 2.0), 0.0)
        wm = mse * w                                         # (tb, 1)

        # Reduce across the tile's rows and write one full (1, 8, 128) slab per
        # output (unmasked lane-dense stores, tiny HBM writeback).
        lanes = num_ref.shape[-1]
        num_lane = jnp.sum(jnp.broadcast_to(wm, (wm.shape[0], lanes)),
                           axis=0, keepdims=True)            # (1, lanes), all equal
        cnt_lane = jnp.sum(jnp.broadcast_to(treated, (treated.shape[0], lanes)),
                           axis=0, keepdims=True)
        num_ref[...] = jnp.broadcast_to(num_lane[None], num_ref.shape)
        cnt_ref[...] = jnp.broadcast_to(cnt_lane[None], cnt_ref.shape)


def _choose_gene_tile(G, cap):
    """Largest 128-multiple tile (<= cap) whose zero-padding overhead is <= 12.5%."""
    g128 = _round_up(G, 128)
    cap = max(128, (cap // 128) * 128)
    if g128 <= cap:
        return g128, g128
    for tg in range(cap, 127, -128):
        padded = _round_up(G, tg)
        if (padded - g128) * 8 <= padded:
            return tg, padded
    return 128, g128


def _choose_row_tile(B, cap, align):
    """Largest align-multiple row tile (<= cap) with <= 12.5% zero-row padding."""
    b_al = _round_up(B, align)
    cap = max(align, (cap // align) * align)
    if b_al <= cap:
        return b_al, b_al
    for tb in range(cap, align - 1, -align):
        padded = _round_up(B, tb)
        if (padded - b_al) * 8 <= padded:
            return tb, padded
    return align, b_al


def afmse_loss_wei(y, pred, degs, *, binary_degs=None, tb_cap=None, tg_cap=None):
    B, G = y.shape
    assert pred.shape == (B, G) and degs.shape == (B, G)

    if binary_degs is None:
        binary_degs = bool(degs.dtype == jnp.bool_)   # only safe to dedup if 0/1
    if degs.dtype == jnp.bool_:
        degs = degs.astype(jnp.int8)

    # ---- generation-aware sizing -------------------------------------------------
    phys_vmem, n_cores = _tpu_generation()
    small_vmem = phys_vmem <= 72 * _MiB               # v7x-class (64 MiB) parts
    if tg_cap is None:
        tg_cap = 2048 if small_vmem else 4096
    if tb_cap is None:
        tb_cap = 256 if small_vmem else 512
    input_budget = 24 * _MiB if small_vmem else 56 * _MiB
    vmem_limit = 44 * _MiB if small_vmem else 96 * _MiB

    itemsizes = [y.dtype.itemsize, pred.dtype.itemsize, degs.dtype.itemsize]
    # sublane alignment follows the narrowest streamed dtype (f32:8, bf16:16, int8:32)
    align = max(8, 32 // max(1, min(itemsizes)))

    # ---- tile selection + zero padding (mathematically neutral) -------------------
    tg, G_pad = _choose_gene_tile(G, tg_cap)
    row_cap = tb_cap
    if n_cores >= 2:
        # multi-TC parts: aim for >= 2 row tiles so both TensorCores get work
        b_al = _round_up(B, align)
        if b_al >= 2 * align:
            row_cap = min(tb_cap, max(align, (b_al // 2 // align) * align))
    tb, B_pad = _choose_row_tile(B, row_cap, align)

    n_accs = 4 if binary_degs else 5

    def working_set(tb_, tg_):
        in_bytes = 2 * tb_ * tg_ * sum(itemsizes)     # double-buffered input tiles
        acc_bytes = n_accs * tb_ * 128 * 4            # f32 lane-partial accumulators
        tmp_bytes = 8 * tb_ * 128 * 4                 # per-chunk f32 temporaries (generous)
        out_bytes = 2 * 2 * 8 * 128 * 4               # double-buffered (1,8,128) outputs
        return in_bytes + acc_bytes + tmp_bytes + out_bytes

    # Shrink tiles (halving keeps padded-dim divisibility and alignment) until the
    # honest working-set estimate fits the budget, or no legal shrink remains.
    while working_set(tb, tg) > input_budget:
        if tg >= tb and tg % 256 == 0:
            tg //= 2
        elif tb % (2 * align) == 0:
            tb //= 2
        elif tg % 256 == 0:
            tg //= 2
        else:
            break
    vmem_limit = max(vmem_limit, working_set(tb, tg) + 8 * _MiB)
    vmem_limit = int(min(vmem_limit, phys_vmem - 8 * _MiB))

    if B_pad != B or G_pad != G:
        pad = ((0, B_pad - B), (0, G_pad - G))
        y = jnp.pad(y, pad)
        pred = jnp.pad(pred, pad)
        degs = jnp.pad(degs, pad)

    n_chunks = tg // 128
    grid = (B_pad // tb, G_pad // tg)
    n_row_tiles = grid[0]

    kernel = functools.partial(_afmse_kernel, binary=binary_degs, n_chunks=n_chunks)
    scratch = [pltpu.VMEM((tb, 128), jnp.float32)] * n_accs

    flops = (9 if binary_degs else 13) * B_pad * G_pad
    bytes_accessed = B_pad * G_pad * sum(itemsizes) + 2 * n_row_tiles * 8 * 128 * 4

    num_out, cnt_out = pl.pallas_call(
        kernel,
        out_shape=(jax.ShapeDtypeStruct((n_row_tiles, 8, 128), jnp.float32),
                   jax.ShapeDtypeStruct((n_row_tiles, 8, 128), jnp.float32)),
        grid_spec=pltpu.PrefetchScalarGridSpec(
            num_scalar_prefetch=0,
            grid=grid,
            in_specs=[pl.BlockSpec((tb, tg), lambda i, k: (i, k)),
                      pl.BlockSpec((tb, tg), lambda i, k: (i, k)),
                      pl.BlockSpec((tb, tg), lambda i, k: (i, k))],
            out_specs=[pl.BlockSpec((1, 8, 128), lambda i, k: (i, 0, 0)),
                       pl.BlockSpec((1, 8, 128), lambda i, k: (i, 0, 0))],
            scratch_shapes=scratch,
        ),
        compiler_params=pltpu.CompilerParams(
            dimension_semantics=("parallel", "arbitrary"),
            vmem_limit_bytes=vmem_limit),
        cost_estimate=pl.CostEstimate(flops=flops, transcendentals=0,
                                      bytes_accessed=bytes_accessed),
    )(y, pred, degs)

    # tiny final reduction (glue): loss = sum(mse * weight) / #treated_rows
    return jnp.sum(num_out[:, 0, 0]) / jnp.sum(cnt_out[:, 0, 0])


def _reference_loss(y, pred, degs):
    """Pure-JAX reference mirroring the PyTorch forward (two-pass masked variance)."""
    y = y.astype(jnp.float32)
    pred = pred.astype(jnp.float32)
    d = degs.astype(jnp.float32)
    mse = jnp.sum((y * d - pred * d) ** 2, axis=1)
    n = jnp.sum(d, axis=1)
    mse = mse / (n + 1e-6)
    treated = (n != 0).astype(jnp.float32)
    m = (d != 0).astype(jnp.float32)
    nm = jnp.sum(m, axis=1)
    mean = jnp.sum(y * m, axis=1) / jnp.maximum(nm, 1.0)
    var = jnp.sum(m * (y - mean[:, None]) ** 2, axis=1) / jnp.maximum(nm - 1.0, 1.0)
    w = jnp.where(treated > 0, jnp.clip(1.0 / var, 0.3, 2.0), 0.0)
    return jnp.sum(mse * w) / jnp.sum(treated)


if __name__ == "__main__":
    key = jax.random.PRNGKey(0)
    B, G, N_DE = 8, 256, 50   # 8 cells, 256 genes, 50 DE genes per treated row

    ky, kp, kperm = jax.random.split(key, 3)
    y = jax.random.normal(ky, (B, G), dtype=jnp.float32)
    pred = jax.random.normal(kp, (B, G), dtype=jnp.float32)

    # DE mask: rows 0..5 get exactly 50 DE genes, rows 6,7 get none.
    # Shipped as int8 (narrow dtype) -- the kernel widens it on-chip.
    degs_np = np.zeros((B, G), dtype=np.int8)
    perm_keys = jax.random.split(kperm, B)
    for b in range(B - 2):
        idx = np.asarray(jax.random.permutation(perm_keys[b], G))[:N_DE]
        degs_np[b, idx] = 1
    degs = jnp.asarray(degs_np)

    ref = jax.block_until_ready(_reference_loss(y, pred, degs))

    # General path: correct for arbitrary real-valued degs.
    loss_general = jax.block_until_ready(
        jax.jit(functools.partial(afmse_loss_wei, binary_degs=False))(y, pred, degs))
    # Deduplicated path: module's 0/1-mask assumption (mask == degs).
    loss_binary = jax.block_until_ready(
        jax.jit(functools.partial(afmse_loss_wei, binary_degs=True))(y, pred, degs))

    assert np.allclose(np.asarray(loss_general), np.asarray(ref),
                       rtol=1e-4, atol=1e-5), (loss_general, ref)
    assert np.allclose(np.asarray(loss_binary), np.asarray(ref),
                       rtol=1e-4, atol=1e-5), (loss_binary, ref)
    print("KERNEL_OK")
</pallas_src>

<mosaic_0001>
module attributes {stable_mosaic.version = 11 : i64} {
  func.func @_afmse_kernel(%arg0: i32, %arg1: i32, %arg2: memref<32x256xf32, #tpu.memory_space<vmem>>, %arg3: memref<32x256xf32, #tpu.memory_space<vmem>>, %arg4: memref<32x256xi8, #tpu.memory_space<vmem>>, %arg5: memref<1x8x128xf32, #tpu.memory_space<vmem>>, %arg6: memref<1x8x128xf32, #tpu.memory_space<vmem>>, %arg7: memref<32x128xf32, #tpu.memory_space<vmem>>, %arg8: memref<32x128xf32, #tpu.memory_space<vmem>>, %arg9: memref<32x128xf32, #tpu.memory_space<vmem>>, %arg10: memref<32x128xf32, #tpu.memory_space<vmem>>, %arg11: memref<32x128xf32, #tpu.memory_space<vmem>>) attributes {dimension_semantics = [#tpu.dimension_semantics<parallel>, #tpu.dimension_semantics<arbitrary>], iteration_bounds = array<i64: 1, 1>, scalar_prefetch = 0 : i64, scratch_operands = 5 : i64, tpu.core_type = #tpu.core_type<tc>, window_params = [{transform_indices = @transform_0, window_bounds = array<i64: 32, 256>}, {transform_indices = @transform_1, window_bounds = array<i64: 32, 256>}, {transform_indices = @transform_2, window_bounds = array<i64: 32, 256>}, {transform_indices = @transform_3, window_bounds = array<i64: 1, 8, 128>}, {transform_indices = @transform_4, window_bounds = array<i64: 1, 8, 128>}]} {
    %c0_i32 = arith.constant 0 : i32
    %0 = arith.cmpi eq, %arg1, %c0_i32 : i32
    %1 = arith.extui %0 : i1 to i32
    %c0_i32_0 = arith.constant 0 : i32
    %2 = arith.cmpi ne, %1, %c0_i32_0 : i32
    scf.if %2 {
      %cst_54 = arith.constant 0.000000e+00 : f32
      %64 = vector.broadcast %cst_54 : f32 to vector<32x128xf32>
      %c0_55 = arith.constant 0 : index
      %c0_56 = arith.constant 0 : index
      %65 = vector.load %arg7[%c0_55, %c0_56] : memref<32x128xf32, #tpu.memory_space<vmem>>, vector<32x128xf32>
      tpu.vector_store %arg7[%c0_55, %c0_56], %64 {strides = array<i32>} : memref<32x128xf32, #tpu.memory_space<vmem>>, vector<32x128xf32>,
      %cst_57 = arith.constant 0.000000e+00 : f32
      %66 = vector.broadcast %cst_57 : f32 to vector<32x128xf32>
      %c0_58 = arith.constant 0 : index
      %c0_59 = arith.constant 0 : index
      %67 = vector.load %arg8[%c0_58, %c0_59] : memref<32x128xf32, #tpu.memory_space<vmem>>, vector<32x128xf32>
      tpu.vector_store %arg8[%c0_58, %c0_59], %66 {strides = array<i32>} : memref<32x128xf32, #tpu.memory_space<vmem>>, vector<32x128xf32>,
      %cst_60 = arith.constant 0.000000e+00 : f32
      %68 = vector.broadcast %cst_60 : f32 to vector<32x128xf32>
      %c0_61 = arith.constant 0 : index
      %c0_62 = arith.constant 0 : index
      %69 = vector.load %arg9[%c0_61, %c0_62] : memref<32x128xf32, #tpu.memory_space<vmem>>, vector<32x128xf32>
      tpu.vector_store %arg9[%c0_61, %c0_62], %68 {strides = array<i32>} : memref<32x128xf32, #tpu.memory_space<vmem>>, vector<32x128xf32>,
      %cst_63 = arith.constant 0.000000e+00 : f32
      %70 = vector.broadcast %cst_63 : f32 to vector<32x128xf32>
      %c0_64 = arith.constant 0 : index
      %c0_65 = arith.constant 0 : index
      %71 = vector.load %arg10[%c0_64, %c0_65] : memref<32x128xf32, #tpu.memory_space<vmem>>, vector<32x128xf32>
      tpu.vector_store %arg10[%c0_64, %c0_65], %70 {strides = array<i32>} : memref<32x128xf32, #tpu.memory_space<vmem>>, vector<32x128xf32>,
      %cst_66 = arith.constant 0.000000e+00 : f32
      %72 = vector.broadcast %cst_66 : f32 to vector<32x128xf32>
      %c0_67 = arith.constant 0 : index
      %c0_68 = arith.constant 0 : index
      %73 = vector.load %arg11[%c0_67, %c0_68] : memref<32x128xf32, #tpu.memory_space<vmem>>, vector<32x128xf32>
      tpu.vector_store %arg11[%c0_67, %c0_68], %72 {strides = array<i32>} : memref<32x128xf32, #tpu.memory_space<vmem>>, vector<32x128xf32>,
    } else {
    }
    %c0 = arith.constant 0 : index
    %c0_1 = arith.constant 0 : index
    %3 = vector.load %arg2[%c0, %c0_1] : memref<32x256xf32, #tpu.memory_space<vmem>>, vector<32x128xf32>
    %c0_2 = arith.constant 0 : index
    %c0_3 = arith.constant 0 : index
    %4 = vector.load %arg3[%c0_2, %c0_3] : memref<32x256xf32, #tpu.memory_space<vmem>>, vector<32x128xf32>
    %c0_4 = arith.constant 0 : index
    %c0_5 = arith.constant 0 : index
    %5 = vector.load %arg4[%c0_4, %c0_5] : memref<32x256xi8, #tpu.memory_space<vmem>>, vector<32x128xi8>
    %6 = arith.sitofp %5 : vector<32x128xi8> to vector<32x128xf32>
    %7 = arith.mulf %3, %6 : vector<32x128xf32>
    %8 = arith.mulf %4, %6 : vector<32x128xf32>
    %9 = arith.subf %7, %8 : vector<32x128xf32>
    %c0_6 = arith.constant 0 : index
    %c0_7 = arith.constant 0 : index
    %10 = vector.load %arg7[%c0_6, %c0_7] : memref<32x128xf32, #tpu.memory_space<vmem>>, vector<32x128xf32>
    %11 = arith.mulf %9, %9 : vector<32x128xf32>
    %12 = arith.addf %10, %11 : vector<32x128xf32>
    %c0_8 = arith.constant 0 : index
    %c0_9 = arith.constant 0 : index
    %13 = vector.load %arg7[%c0_8, %c0_9] : memref<32x128xf32, #tpu.memory_space<vmem>>, vector<32x128xf32>
    tpu.vector_store %arg7[%c0_8, %c0_9], %12 {strides = array<i32>} : memref<32x128xf32, #tpu.memory_space<vmem>>, vector<32x128xf32>,
    %c0_10 = arith.constant 0 : index
    %c0_11 = arith.constant 0 : index
    %14 = vector.load %arg8[%c0_10, %c0_11] : memref<32x128xf32, #tpu.memory_space<vmem>>, vector<32x128xf32>
    %15 = arith.addf %14, %6 : vector<32x128xf32>
    %c0_12 = arith.constant 0 : index
    %c0_13 = arith.constant 0 : index
    %16 = vector.load %arg8[%c0_12, %c0_13] : memref<32x128xf32, #tpu.memory_space<vmem>>, vector<32x128xf32>
    tpu.vector_store %arg8[%c0_12, %c0_13], %15 {strides = array<i32>} : memref<32x128xf32, #tpu.memory_space<vmem>>, vector<32x128xf32>,
    %cst = arith.constant 0.000000e+00 : f32
    %17 = vector.broadcast %cst : f32 to vector<32x128xf32>
    %18 = arith.cmpf one, %6, %17 : vector<32x128xf32>
    %19 = arith.extui %18 : vector<32x128xi1> to vector<32x128xi32>
    %20 = arith.sitofp %19 : vector<32x128xi32> to vector<32x128xf32>
    %c0_14 = arith.constant 0 : index
    %c0_15 = arith.constant 0 : index
    %21 = vector.load %arg11[%c0_14, %c0_15] : memref<32x128xf32, #tpu.memory_space<vmem>>, vector<32x128xf32>
    %22 = arith.addf %21, %20 : vector<32x128xf32>
    %c0_16 = arith.constant 0 : index
    %c0_17 = arith.constant 0 : index
    %23 = vector.load %arg11[%c0_16, %c0_17] : memref<32x128xf32, #tpu.memory_space<vmem>>, vector<32x128xf32>
    tpu.vector_store %arg11[%c0_16, %c0_17], %22 {strides = array<i32>} : memref<32x128xf32, #tpu.memory_space<vmem>>, vector<32x128xf32>,
    %24 = arith.mulf %3, %20 : vector<32x128xf32>
    %c0_18 = arith.constant 0 : index
    %c0_19 = arith.constant 0 : index
    %25 = vector.load %arg9[%c0_18, %c0_19] : memref<32x128xf32, #tpu.memory_space<vmem>>, vector<32x128xf32>
    %26 = arith.addf %25, %24 : vector<32x128xf32>
    %c0_20 = arith.constant 0 : index
    %c0_21 = arith.constant 0 : index
    %27 = vector.load %arg9[%c0_20, %c0_21] : memref<32x128xf32, #tpu.memory_space<vmem>>, vector<32x128xf32>
    tpu.vector_store %arg9[%c0_20, %c0_21], %26 {strides = array<i32>} : memref<32x128xf32, #tpu.memory_space<vmem>>, vector<32x128xf32>,
    %c0_22 = arith.constant 0 : index
    %c0_23 = arith.constant 0 : index
    %28 = vector.load %arg10[%c0_22, %c0_23] : memref<32x128xf32, #tpu.memory_space<vmem>>, vector<32x128xf32>
    %29 = arith.mulf %24, %3 : vector<32x128xf32>
    %30 = arith.addf %28, %29 : vector<32x128xf32>
    %c0_24 = arith.constant 0 : index
    %c0_25 = arith.constant 0 : index
    %31 = vector.load %arg10[%c0_24, %c0_25] : memref<32x128xf32, #tpu.memory_space<vmem>>, vector<32x128xf32>
    tpu.vector_store %arg10[%c0_24, %c0_25], %30 {strides = array<i32>} : memref<32x128xf32, #tpu.memory_space<vmem>>, vector<32x128xf32>,
    %c0_26 = arith.constant 0 : index
    %c128 = arith.constant 128 : index
    %32 = vector.load %arg2[%c0_26, %c128] : memref<32x256xf32, #tpu.memory_space<vmem>>, vector<32x128xf32>
    %c0_27 = arith.constant 0 : index
    %c128_28 = arith.constant 128 : index
    %33 = vector.load %arg3[%c0_27, %c128_28] : memref<32x256xf32, #tpu.memory_space<vmem>>, vector<32x128xf32>
    %c0_29 = arith.constant 0 : index
    %c128_30 = arith.constant 128 : index
    %34 = vector.load %arg4[%c0_29, %c128_30] : memref<32x256xi8, #tpu.memory_space<vmem>>, vector<32x128xi8>
    %35 = arith.sitofp %34 : vector<32x128xi8> to vector<32x128xf32>
    %36 = arith.mulf %32, %35 : vector<32x128xf32>
    %37 = arith.mulf %33, %35 : vector<32x128xf32>
    %38 = arith.subf %36, %37 : vector<32x128xf32>
    %c0_31 = arith.constant 0 : index
    %c0_32 = arith.constant 0 : index
    %39 = vector.load %arg7[%c0_31, %c0_32] : memref<32x128xf32, #tpu.memory_space<vmem>>, vector<32x128xf32>
    %40 = arith.mulf %38, %38 : vector<32x128xf32>
    %41 = arith.addf %39, %40 : vector<32x128xf32>
    %c0_33 = arith.constant 0 : index
    %c0_34 = arith.constant 0 : index
    %42 = vector.load %arg7[%c0_33, %c0_34] : memref<32x128xf32, #tpu.memory_space<vmem>>, vector<32x128xf32>
    tpu.vector_store %arg7[%c0_33, %c0_34], %41 {strides = array<i32>} : memref<32x128xf32, #tpu.memory_space<vmem>>, vector<32x128xf32>,
    %c0_35 = arith.constant 0 : index
    %c0_36 = arith.constant 0 : index
    %43 = vector.load %arg8[%c0_35, %c0_36] : memref<32x128xf32, #tpu.memory_space<vmem>>, vector<32x128xf32>
    %44 = arith.addf %43, %35 : vector<32x128xf32>
    %c0_37 = arith.constant 0 : index
    %c0_38 = arith.constant 0 : index
    %45 = vector.load %arg8[%c0_37, %c0_38] : memref<32x128xf32, #tpu.memory_space<vmem>>, vector<32x128xf32>
    tpu.vector_store %arg8[%c0_37, %c0_38], %44 {strides = array<i32>} : memref<32x128xf32, #tpu.memory_space<vmem>>, vector<32x128xf32>,
    %cst_39 = arith.constant 0.000000e+00 : f32
    %46 = vector.broadcast %cst_39 : f32 to vector<32x128xf32>
    %47 = arith.cmpf one, %35, %46 : vector<32x128xf32>
    %48 = arith.extui %47 : vector<32x128xi1> to vector<32x128xi32>
    %49 = arith.sitofp %48 : vector<32x128xi32> to vector<32x128xf32>
    %c0_40 = arith.constant 0 : index
    %c0_41 = arith.constant 0 : index
    %50 = vector.load %arg11[%c0_40, %c0_41] : memref<32x128xf32, #tpu.memory_space<vmem>>, vector<32x128xf32>
    %51 = arith.addf %50, %49 : vector<32x128xf32>
    %c0_42 = arith.constant 0 : index
    %c0_43 = arith.constant 0 : index
    %52 = vector.load %arg11[%c0_42, %c0_43] : memref<32x128xf32, #tpu.memory_space<vmem>>, vector<32x128xf32>
    tpu.vector_store %arg11[%c0_42, %c0_43], %51 {strides = array<i32>} : memref<32x128xf32, #tpu.memory_space<vmem>>, vector<32x128xf32>,
    %53 = arith.mulf %32, %49 : vector<32x128xf32>
    %c0_44 = arith.constant 0 : index
    %c0_45 = arith.constant 0 : index
    %54 = vector.load %arg9[%c0_44, %c0_45] : memref<32x128xf32, #tpu.memory_space<vmem>>, vector<32x128xf32>
    %55 = arith.addf %54, %53 : vector<32x128xf32>
    %c0_46 = arith.constant 0 : index
    %c0_47 = arith.constant 0 : index
    %56 = vector.load %arg9[%c0_46, %c0_47] : memref<32x128xf32, #tpu.memory_space<vmem>>, vector<32x128xf32>
    tpu.vector_store %arg9[%c0_46, %c0_47], %55 {strides = array<i32>} : memref<32x128xf32, #tpu.memory_space<vmem>>, vector<32x128xf32>,
    %c0_48 = arith.constant 0 : index
    %c0_49 = arith.constant 0 : index
    %57 = vector.load %arg10[%c0_48, %c0_49] : memref<32x128xf32, #tpu.memory_space<vmem>>, vector<32x128xf32>
    %58 = arith.mulf %53, %32 : vector<32x128xf32>
    %59 = arith.addf %57, %58 : vector<32x128xf32>
    %c0_50 = arith.constant 0 : index
    %c0_51 = arith.constant 0 : index
    %60 = vector.load %arg10[%c0_50, %c0_51] : memref<32x128xf32, #tpu.memory_space<vmem>>, vector<32x128xf32>
    tpu.vector_store %arg10[%c0_50, %c0_51], %59 {strides = array<i32>} : memref<32x128xf32, #tpu.memory_space<vmem>>, vector<32x128xf32>,
    %c0_i32_52 = arith.constant 0 : i32
    %61 = arith.cmpi eq, %arg1, %c0_i32_52 : i32
    %62 = arith.extui %61 : i1 to i32
    %c0_i32_53 = arith.constant 0 : i32
    %63 = arith.cmpi ne, %62, %c0_i32_53 : i32
    scf.if %63 {
      %c0_54 = arith.constant 0 : index
      %c0_55 = arith.constant 0 : index
      %64 = vector.load %arg7[%c0_54, %c0_55] : memref<32x128xf32, #tpu.memory_space<vmem>>, vector<32x128xf32>
      %cst_56 = arith.constant dense<0.000000e+00> : vector<32xf32>
      %65 = vector.multi_reduction <add>, %64, %cst_56 [1] : vector<32x128xf32> to vector<32xf32>
      %66 = vector.shape_cast %65 : vector<32xf32> to vector<32x1xf32>
      %c0_57 = arith.constant 0 : index
      %c0_58 = arith.constant 0 : index
      %67 = vector.load %arg8[%c0_57, %c0_58] : memref<32x128xf32, #tpu.memory_space<vmem>>, vector<32x128xf32>
      %cst_59 = arith.constant dense<0.000000e+00> : vector<32xf32>
      %68 = vector.multi_reduction <add>, %67, %cst_59 [1] : vector<32x128xf32> to vector<32xf32>
      %69 = vector.shape_cast %68 : vector<32xf32> to vector<32x1xf32>
      %c0_60 = arith.constant 0 : index
      %c0_61 = arith.constant 0 : index
      %70 = vector.load %arg9[%c0_60, %c0_61] : memref<32x128xf32, #tpu.memory_space<vmem>>, vector<32x128xf32>
      %cst_62 = arith.constant dense<0.000000e+00> : vector<32xf32>
      %71 = vector.multi_reduction <add>, %70, %cst_62 [1] : vector<32x128xf32> to vector<32xf32>
      %72 = vector.shape_cast %71 : vector<32xf32> to vector<32x1xf32>
      %c0_63 = arith.constant 0 : index
      %c0_64 = arith.constant 0 : index
      %73 = vector.load %arg10[%c0_63, %c0_64] : memref<32x128xf32, #tpu.memory_space<vmem>>, vector<32x128xf32>
      %cst_65 = arith.constant dense<0.000000e+00> : vector<32xf32>
      %74 = vector.multi_reduction <add>, %73, %cst_65 [1] : vector<32x128xf32> to vector<32xf32>
      %75 = vector.shape_cast %74 : vector<32xf32> to vector<32x1xf32>
      %c0_66 = arith.constant 0 : index
      %c0_67 = arith.constant 0 : index
      %76 = vector.load %arg11[%c0_66, %c0_67] : memref<32x128xf32, #tpu.memory_space<vmem>>, vector<32x128xf32>
      %cst_68 = arith.constant dense<0.000000e+00> : vector<32xf32>
      %77 = vector.multi_reduction <add>, %76, %cst_68 [1] : vector<32x128xf32> to vector<32xf32>
      %78 = vector.shape_cast %77 : vector<32xf32> to vector<32x1xf32>
      %cst_69 = arith.constant 0.000000e+00 : f32
      %79 = vector.broadcast %cst_69 : f32 to vector<32x1xf32>
      %80 = arith.cmpf one, %69, %79 : vector<32x1xf32>
      %81 = arith.extui %80 : vector<32x1xi1> to vector<32x1xi32>
      %82 = arith.sitofp %81 : vector<32x1xi32> to vector<32x1xf32>
      %cst_70 = arith.constant 9.99999997E-7 : f32
      %83 = vector.broadcast %cst_70 : f32 to vector<32x1xf32>
      %84 = arith.addf %69, %83 : vector<32x1xf32>
      %85 = arith.divf %66, %84 : vector<32x1xf32>
      %cst_71 = arith.constant 1.000000e+00 : f32
      %86 = vector.broadcast %cst_71 : f32 to vector<32x1xf32>
      %87 = arith.maximumf %78, %86 : vector<32x1xf32>
      %88 = arith.divf %72, %87 : vector<32x1xf32>
      %89 = arith.mulf %78, %88 : vector<32x1xf32>
      %90 = arith.mulf %89, %88 : vector<32x1xf32>
      %91 = arith.subf %75, %90 : vector<32x1xf32>
      %cst_72 = arith.constant 1.000000e+00 : f32
      %92 = vector.broadcast %cst_72 : f32 to vector<32x1xf32>
      %93 = arith.subf %78, %92 : vector<32x1xf32>
      %cst_73 = arith.constant 1.000000e+00 : f32
      %94 = vector.broadcast %cst_73 : f32 to vector<32x1xf32>
      %95 = arith.maximumf %93, %94 : vector<32x1xf32>
      %96 = arith.divf %91, %95 : vector<32x1xf32>
      %cst_74 = arith.constant 1.000000e-30 : f32
      %97 = vector.broadcast %cst_74 : f32 to vector<32x1xf32>
      %98 = arith.maximumf %96, %97 : vector<32x1xf32>
      %cst_75 = arith.constant 0.000000e+00 : f32
      %99 = vector.broadcast %cst_75 : f32 to vector<32x1xf32>
      %100 = arith.cmpf ogt, %82, %99 : vector<32x1xf32>
      %cst_76 = arith.constant 1.000000e+00 : f32
      %101 = vector.broadcast %cst_76 : f32 to vector<32x1xf32>
      %102 = arith.divf %101, %98 : vector<32x1xf32>
      %cst_77 = arith.constant 3.000000e-01 : f32
      %cst_78 = arith.constant 2.000000e+00 : f32
      %103 = vector.broadcast %cst_77 : f32 to vector<32x1xf32>
      %104 = arith.maximumf %103, %102 : vector<32x1xf32>
      %105 = vector.broadcast %cst_78 : f32 to vector<32x1xf32>
      %106 = arith.minimumf %105, %104 : vector<32x1xf32>
      %cst_79 = arith.constant 0.000000e+00 : f32
      %107 = vector.broadcast %cst_79 : f32 to vector<32x1xf32>
      %108 = arith.select %100, %106, %107 : vector<32x1xi1>, vector<32x1xf32>
      %109 = arith.mulf %85, %108 : vector<32x1xf32>
      %110 = vector.shape_cast %109 : vector<32x1xf32> to vector<32x1xf32>
      %111 = vector.broadcast %110 : vector<32x1xf32> to vector<32x128xf32>
      %cst_80 = arith.constant dense<0.000000e+00> : vector<128xf32>
      %112 = vector.multi_reduction <add>, %111, %cst_80 [0] : vector<32x128xf32> to vector<128xf32>
      %113 = vector.shape_cast %112 : vector<128xf32> to vector<1x128xf32>
      %114 = vector.shape_cast %82 : vector<32x1xf32> to vector<32x1xf32>
      %115 = vector.broadcast %114 : vector<32x1xf32> to vector<32x128xf32>
      %cst_81 = arith.constant dense<0.000000e+00> : vector<128xf32>
      %116 = vector.multi_reduction <add>, %115, %cst_81 [0] : vector<32x128xf32> to vector<128xf32>
      %117 = vector.shape_cast %116 : vector<128xf32> to vector<1x128xf32>
      %118 = vector.shape_cast %113 : vector<1x128xf32> to vector<1x1x128xf32>
      %119 = vector.shape_cast %118 : vector<1x1x128xf32> to vector<1x1x128xf32>
      %120 = vector.broadcast %119 : vector<1x1x128xf32> to vector<1x8x128xf32>
      %c0_82 = arith.constant 0 : index
      %c0_83 = arith.constant 0 : index
      %c0_84 = arith.constant 0 : index
      %121 = vector.load %arg5[%c0_82, %c0_83, %c0_84] : memref<1x8x128xf32, #tpu.memory_space<vmem>>, vector<1x8x128xf32>
      tpu.vector_store %arg5[%c0_82, %c0_83, %c0_84], %120 {strides = array<i32>} : memref<1x8x128xf32, #tpu.memory_space<vmem>>, vector<1x8x128xf32>,
      %122 = vector.shape_cast %117 : vector<1x128xf32> to vector<1x1x128xf32>
      %123 = vector.shape_cast %122 : vector<1x1x128xf32> to vector<1x1x128xf32>
      %124 = vector.broadcast %123 : vector<1x1x128xf32> to vector<1x8x128xf32>
      %c0_85 = arith.constant 0 : index
      %c0_86 = arith.constant 0 : index
      %c0_87 = arith.constant 0 : index
      %125 = vector.load %arg6[%c0_85, %c0_86, %c0_87] : memref<1x8x128xf32, #tpu.memory_space<vmem>>, vector<1x8x128xf32>
      tpu.vector_store %arg6[%c0_85, %c0_86, %c0_87], %124 {strides = array<i32>} : memref<1x8x128xf32, #tpu.memory_space<vmem>>, vector<1x8x128xf32>,
    } else {
    }
    return
  }
  func.func @transform_0(%arg0: i32, %arg1: i32) -> (i32, i32) {
    %c0_i32 = arith.constant 0 : i32
    return %arg0, %arg1 : i32, i32
  }
  func.func @transform_1(%arg0: i32, %arg1: i32) -> (i32, i32) {
    %c0_i32 = arith.constant 0 : i32
    return %arg0, %arg1 : i32, i32
  }
  func.func @transform_2(%arg0: i32, %arg1: i32) -> (i32, i32) {
    %c0_i32 = arith.constant 0 : i32
    return %arg0, %arg1 : i32, i32
  }
  func.func @transform_3(%arg0: i32, %arg1: i32) -> (i32, i32, i32) {
    %c0_i32 = arith.constant 0 : i32
    %c0_i32_0 = arith.constant 0 : i32
    %c0_i32_1 = arith.constant 0 : i32
    return %arg0, %c0_i32, %c0_i32_0 : i32, i32, i32
  }
  func.func @transform_4(%arg0: i32, %arg1: i32) -> (i32, i32, i32) {
    %c0_i32 = arith.constant 0 : i32
    %c0_i32_0 = arith.constant 0 : i32
    %c0_i32_1 = arith.constant 0 : i32
    return %arg0, %c0_i32, %c0_i32_0 : i32, i32, i32
  }
}

</mosaic_0001>

<bundles_post_ra>
// kernel: afmse_loss_wei.1
= control target key start
LH: loop header
LB: loop body
LE: loop exit
PB: predicated region body
PF: predicated region fallthrough
CT: control target
= control target key end

     0   :  { %10 = vsyncpa [#allocation8], 0  ;;  %s860_s0 = inlined_call_operand.hbm [shape: f32[32,256], index: 0, kind: input, shape index: {}]   ;;  %s861_s1 = inlined_call_operand.hbm [shape: f32[32,256], index: 1, kind: input, shape index: {}]   ;;  %s862_s2 = inlined_call_operand.hbm [shape: s8[32,256], index: 2, kind: input, shape index: {}]   ;;  %s863_s3 = inlined_call_operand.hbm [shape: f32[1,8,128], index: 3, kind: output, shape index: {0}]   ;;  %s864_s4 = inlined_call_operand.hbm [shape: f32[1,8,128], index: 4, kind: output, shape index: {1}]  }
   0x1   :  { %11 = vsyncpa [#allocation11], 0 }
   0x2   :  { %12 = vsyncpa [#allocation9], 0 }
   0x3   :  { %13 = vsyncpa [#allocation15], 0  ;;  %s690_s15 = smov [#allocation10]   ;;  %s691_s17 = smov [#allocation7]  }
   0x4   :  { %s31_s16 = sshll.u32 %s690_s15, 4  ;;  %s19_s18 = sshll.u32 %s691_s17, 4  ;;  %s32_s16 = int_to_ptr.vmem [resolvable:$true] %s31_s16  ;;  %s723_s18 = int_to_ptr.vmem [resolvable:$true] %s19_s18 }
   0x5   :  { %s572_s21 = scalar_lea.hbm %s861_s1, 1024 }
   0x6   :  { %p573_p0 = scmp.ne.s32.totalorder %s861_s1, %s572_s21  ;;  %p576_p1 = scmp.lt.u32.totalorder %s572_s21, %s861_s1 }
   0x8   :  { %p578_p2 = pnand %p576_p1, %p573_p0 }
   0xa   :  { %581 = shalt.err (!%p578_p2)
}
   0xb   :  { %s582_s26 = scalar_lea.vmem %s32_s16, 1024  ;;  %p587_p4 = scmp.lt.s32.totalorder %s32_s16, %s32_s16 }
   0xc   :  { %p583_p3 = scmp.ne.s32.totalorder %s32_s16, %s582_s26  ;;  %p588_p5 = scmp.lt.s32.totalorder %s582_s26, %s582_s26 }
   0xe   :  { %p589_p6 = por %p588_p5, %p587_p4 }
  0x10   :  { %p590_p7 = pnand %p589_p6, %p583_p3 }
  0x12   :  { %593 = shalt.err (!%p590_p7)
}
  0x13   :  { %s692_s27 = smov 256   ;;  %s693_s28 = smov 16  }
  0x14   :  { %37 = dma.hbm_to_vmem [thread:$0]  %s861_s1, 1024, %s32_s16, [#allocation11], %s692_s27, %s692_s27, %s693_s28  }
  0x15   :  { %s594_s7 = scalar_lea.hbm %s860_s0, 1024 }
  0x16   :  { %p595_p8 = scmp.ne.s32.totalorder %s860_s0, %s594_s7  ;;  %p598_p9 = scmp.lt.u32.totalorder %s594_s7, %s860_s0 }
  0x18   :  { %p600_p10 = pnand %p598_p9, %p595_p8 }
  0x1a   :  { %603 = shalt.err (!%p600_p10)
}
  0x1b   :  { %s604_s12 = scalar_lea.vmem %s723_s18, 1024  ;;  %p609_p12 = scmp.lt.s32.totalorder %s723_s18, %s723_s18 }
  0x1c   :  { %p605_p11 = scmp.ne.s32.totalorder %s723_s18, %s604_s12  ;;  %p610_p13 = scmp.lt.s32.totalorder %s604_s12, %s604_s12 }
  0x1e   :  { %p611_p0 = por %p610_p13, %p609_p12 }
  0x20   :  { %p612_p1 = pnand %p611_p0, %p605_p11 }
  0x22   :  { %615 = shalt.err (!%p612_p1)
}
  0x23   :  { %25 = dma.hbm_to_vmem [thread:$0]  %s860_s0, 1024, %s723_s18, [#allocation8], %s692_s27, %s692_s27, %s693_s28  }
  0x24   :  { %s694_s14 = smov [#allocation12]   ;;  %s616_s19 = scalar_lea.hbm %s862_s2, 256 }
  0x25   :  { %s44_s15 = sshll.u32 %s694_s14, 4  ;;  %p617_p2 = scmp.ne.s32.totalorder %s862_s2, %s616_s19  ;;  %s45_s15 = int_to_ptr.vmem [resolvable:$true] %s44_s15 }
  0x26   :  { %p620_p3 = scmp.lt.u32.totalorder %s616_s19, %s862_s2 }
  0x28   :  { %p622_p4 = pnand %p620_p3, %p617_p2 }
  0x2a   :  { %625 = shalt.err (!%p622_p4)
}
  0x2b   :  { %s626_s24 = scalar_lea.vmem %s45_s15, 256  ;;  %p631_p6 = scmp.lt.s32.totalorder %s45_s15, %s45_s15 }
  0x2c   :  { %p627_p5 = scmp.ne.s32.totalorder %s45_s15, %s626_s24  ;;  %p632_p7 = scmp.lt.s32.totalorder %s626_s24, %s626_s24 }
  0x2e   :  { %p633_p8 = por %p632_p7, %p631_p6 }
  0x30   :  { %p634_p9 = pnand %p633_p8, %p627_p5 }
  0x32   :  { %637 = shalt.err (!%p634_p9)
}
  0x33   :  { %47 = dma.hbm_to_vmem [thread:$0]  %s862_s2, 256, %s45_s15, [#allocation11]  }
  0x34   :  { %682 = dma.done.wait [#allocation8], 1024  }
  0x35   :  { %683 = vsyncadd [#allocation8], 4294966272 }
  0x36   :  { %684 = dma.done.wait [#allocation11], 1280  }
  0x37   :  { %685 = vsyncadd [#allocation11], 4294966016  ;;  %v89_v0 = vld [vmem:[#allocation12] sm:$0xff]  ;;  %v202_v1 = vld [vmem:[#allocation12 + $0x8] sm:$0xff]  ;;  %v695_v20 = vmov 0.0   ;;  %s696_s2 = smov [#allocation14]  }
  0x38   :  { %v92_v2 = vunpack.c.2.s8 %v89_v0  ;;  %v205_v3 = vunpack.c.2.s8 %v202_v1  ;;  %v90_v4 = vunpack.c.0.s8 %v89_v0  ;;  %v203_v5 = vunpack.c.0.s8 %v202_v1  ;;  %v194_v18 = vld [vmem:[#allocation7 + $0x8] sm:$0xff]  ;;  %v81_v19 = vld [vmem:[#allocation7] sm:$0xff]  ;;  %v82_v29 = vld [vmem:[#allocation7 + $0x10] sm:$0xff]  ;;  %s502_s25 = sshll.u32 %s696_s2, 4  ;;  %s503_s25 = int_to_ptr.vmem [resolvable:$true] %s502_s25 }
  0x39   :  { %v93_v6 = vunpack.c.3.s8 %v89_v0  ;;  %v206_v7 = vunpack.c.3.s8 %v202_v1  ;;  %v91_v8 = vunpack.c.1.s8 %v89_v0  ;;  %v204_v9 = vunpack.c.1.s8 %v202_v1  ;;  %v195_v30 = vld [vmem:[#allocation7 + $0x18] sm:$0xff]  ;;  %v792_v31 = vld [vmem:[#allocation7 + $0x28] sm:$0xff]  ;;  %v794_v32 = vld [vmem:[#allocation7 + $0x20] sm:$0xff]  ;;  %s638_s26 = scalar_lea.vmem %s503_s25, 128  ;;  %p643_p11 = scmp.lt.s32.totalorder %s503_s25, %s503_s25 }
  0x3a   :  { %v766_v10 = vcvt.s32.f32 %v92_v2  ;;  %v768_v11 = vcvt.s32.f32 %v205_v3  ;;  %v770_v12 = vcvt.s32.f32 %v90_v4  ;;  %v772_v13 = vcvt.s32.f32 %v203_v5  ;;  %v84_v38 = vld [vmem:[#allocation7 + $0x30] sm:$0xff]  ;;  %v197_v39 = vld [vmem:[#allocation7 + $0x38] sm:$0xff]  ;;  %v85_v55 = vld [vmem:[#allocation10] sm:$0xff]  ;;  %p639_p10 = scmp.ne.s32.totalorder %s503_s25, %s638_s26  ;;  %p644_p12 = scmp.lt.s32.totalorder %s638_s26, %s638_s26 }
  0x3b   :  { %v774_v14 = vcvt.s32.f32 %v93_v6  ;;  %v776_v15 = vcvt.s32.f32 %v206_v7  ;;  %v778_v16 = vcvt.s32.f32 %v91_v8  ;;  %v780_v17 = vcvt.s32.f32 %v204_v9  ;;  %v198_v59 = vld [vmem:[#allocation10 + $0x8] sm:$0xff]  ;;  %v86_v60 = vld [vmem:[#allocation10 + $0x10] sm:$0xff]  ;;  %v199_v0 = vld [vmem:[#allocation10 + $0x18] sm:$0xff] }
  0x3c   :  { %vm140_vm0 = vcmp.ne.f32.partialorder %v766_v10, 0.0  ;;  %vm253_vm1 = vcmp.ne.f32.partialorder %v768_v11, 0.0  ;;  %vm138_vm2 = vcmp.ne.f32.partialorder %v770_v12, 0.0  ;;  %vm251_vm3 = vcmp.ne.f32.partialorder %v772_v13, 0.0  ;;  %v87_v9 = vld [vmem:[#allocation10 + $0x20] sm:$0xff]  ;;  %p645_p13 = por %p644_p12, %p643_p11 }
  0x3d   :  { %v518_v21 = vsel %vm140_vm0, 1.0, %v695_v20  ;;  %v522_v22 = vsel %vm253_vm1, 1.0, %v695_v20  ;;  %v516_v23 = vsel %vm138_vm2, 1.0, %v695_v20  ;;  %v520_v24 = vsel %vm251_vm3, 1.0, %v695_v20 }
  0x3e   :  { %v269_v25 = vadd.f32 %v522_v22, %v518_v21  ;;  %v267_v26 = vadd.f32 %v520_v24, %v516_v23  ;;  %v275_v27 = vmul.f32 %v520_v24, %v194_v18  ;;  %v162_v28 = vmul.f32 %v516_v23, %v81_v19  ;;  %p646_p0 = pnand %p645_p13, %p639_p10 }
  0x3f   :  { %vm141_vm4 = vcmp.ne.f32.partialorder %v774_v14, 0.0  ;;  %vm254_vm5 = vcmp.ne.f32.partialorder %v776_v15, 0.0  ;;  %vm139_vm6 = vcmp.ne.f32.partialorder %v778_v16, 0.0  ;;  %vm252_vm7 = vcmp.ne.f32.partialorder %v780_v17, 0.0 }
  0x40   :  { %366 = vadd.xlane.f32.xlu1 %v269_v25  ;;  %362 = vadd.xlane.f32.xlu0 %v267_v26  ;;  %v519_v33 = vsel %vm141_vm4, 1.0, %v695_v20  ;;  %v523_v34 = vsel %vm254_vm5, 1.0, %v695_v20  ;;  %v517_v36 = vsel %vm139_vm6, 1.0, %v695_v20  ;;  %v521_v37 = vsel %vm252_vm7, 1.0, %v695_v20  ;;  %v88_v25 = vld [vmem:[#allocation10 + $0x30] sm:$0xff]  ;;  %v201_v26 = vld [vmem:[#allocation10 + $0x38] sm:$0xff] }
  0x41   :  { %v270_v35 = vadd.f32 %v523_v34, %v519_v33  ;;  %v268_v40 = vadd.f32 %v521_v37, %v517_v36  ;;  %v163_v41 = vmul.f32 %v517_v36, %v82_v29  ;;  %v276_v42 = vmul.f32 %v521_v37, %v195_v30 }
  0x42   :  { %v277_v43 = vmul.f32 %v522_v22, %v792_v31  ;;  %v164_v44 = vmul.f32 %v518_v21, %v794_v32  ;;  %v283_v45 = vadd.f32 %v275_v27, %v162_v28  ;;  %v165_v47 = vmul.f32 %v519_v33, %v84_v38 }
  0x43   :  { %v284_v46 = vadd.f32 %v276_v42, %v163_v41  ;;  %v278_v48 = vmul.f32 %v523_v34, %v197_v39  ;;  %v182_v50 = vmul.f32 %v162_v28, %v81_v19  ;;  %v295_v51 = vmul.f32 %v275_v27, %v194_v18 }
  0x44   :  { %368 = vadd.xlane.f32.xlu1 %v270_v35  ;;  %364 = vadd.xlane.f32.xlu0 %v268_v40  ;;  %v285_v49 = vadd.f32 %v277_v43, %v164_v44  ;;  %v183_v53 = vmul.f32 %v163_v41, %v82_v29  ;;  %v296_v54 = vmul.f32 %v276_v42, %v195_v30 }
  0x45   :  { %v286_v52 = vadd.f32 %v278_v48, %v165_v47  ;;  %v299_v56 = vadd.f32 %v295_v51, %v182_v50  ;;  %v184_v57 = vmul.f32 %v164_v44, %v794_v32  ;;  %v297_v58 = vmul.f32 %v277_v43, %v792_v31 }
  0x46   :  { %v300_v61 = vadd.f32 %v296_v54, %v183_v53  ;;  %v185_v62 = vmul.f32 %v165_v47, %v84_v38  ;;  %v298_v63 = vmul.f32 %v278_v48, %v197_v39  ;;  %v98_v1 = vmul.f32 %v770_v12, %v81_v19  ;;  %v200_v19 = vld [vmem:[#allocation10 + $0x28] sm:$0xff] }
  0x47   :  { %v102_v2 = vmul.f32 %v770_v12, %v85_v55  ;;  %v211_v3 = vmul.f32 %v772_v13, %v194_v18  ;;  %v215_v4 = vmul.f32 %v772_v13, %v198_v59  ;;  %v99_v5 = vmul.f32 %v778_v16, %v82_v29 }
  0x48   :  { %338 = vadd.xlane.f32.xlu0 %v283_v45  ;;  %340 = vadd.xlane.f32.xlu1 %v284_v46  ;;  %v103_v6 = vmul.f32 %v778_v16, %v86_v60  ;;  %v212_v7 = vmul.f32 %v780_v17, %v195_v30  ;;  %v216_v8 = vmul.f32 %v780_v17, %v199_v0 }
  0x49   :  { %v301_v21 = vadd.f32 %v297_v58, %v184_v57  ;;  %v302_v22 = vadd.f32 %v298_v63, %v185_v62  ;;  %v243_v23 = vadd.f32 %v772_v13, %v770_v12  ;;  %v244_v18 = vadd.f32 %v780_v17, %v778_v16 }
  0x4a   :  { %v106_v24 = vsub.f32 %v98_v1, %v102_v2  ;;  %v219_v27 = vsub.f32 %v211_v3, %v215_v4  ;;  %v107_v28 = vsub.f32 %v99_v5, %v103_v6  ;;  %v100_v29 = vmul.f32 %v766_v10, %v794_v32 }
  0x4b   :  { %v104_v30 = vmul.f32 %v766_v10, %v87_v9  ;;  %v220_v33 = vsub.f32 %v212_v7, %v216_v8  ;;  %v213_v34 = vmul.f32 %v768_v11, %v792_v31  ;;  %v217_v35 = vmul.f32 %v768_v11, %v200_v19 }
  0x4c   :  { %342 = vadd.xlane.f32.xlu0 %v285_v49  ;;  %344 = vadd.xlane.f32.xlu1 %v286_v52  ;;  %v101_v12 = vmul.f32 %v774_v14, %v84_v38  ;;  %v105_v13 = vmul.f32 %v774_v14, %v88_v25  ;;  %v214_v16 = vmul.f32 %v776_v15, %v197_v39 }
  0x4d   :  { %v218_v17 = vmul.f32 %v776_v15, %v201_v26  ;;  %v245_v32 = vadd.f32 %v768_v11, %v766_v10  ;;  %v246_v36 = vadd.f32 %v776_v15, %v774_v14  ;;  %v114_v37 = vmul.f32 %v106_v24, %v106_v24 }
  0x4e   :  { %v227_v31 = vmul.f32 %v219_v27, %v219_v27  ;;  %v115_v40 = vmul.f32 %v107_v28, %v107_v28  ;;  %v228_v41 = vmul.f32 %v220_v33, %v220_v33  ;;  %v108_v42 = vsub.f32 %v100_v29, %v104_v30 }
  0x4f   :  { %v221_v38 = vsub.f32 %v213_v34, %v217_v35  ;;  %v109_v43 = vsub.f32 %v101_v12, %v105_v13  ;;  %v222_v44 = vsub.f32 %v214_v16, %v218_v17 }
  0x50   :  { %350 = vadd.xlane.f32.xlu0 %v299_v56  ;;  %352 = vadd.xlane.f32.xlu1 %v300_v61  ;;  %v231_v45 = vadd.f32 %v227_v31, %v114_v37  ;;  %v232_v39 = vadd.f32 %v228_v41, %v115_v40  ;;  %v116_v46 = vmul.f32 %v108_v42, %v108_v42 }
  0x51   :  { %v229_v47 = vmul.f32 %v221_v38, %v221_v38  ;;  %v117_v10 = vmul.f32 %v109_v43, %v109_v43  ;;  %v230_v11 = vmul.f32 %v222_v44, %v222_v44 }
  0x53   :  { %v233_v14 = vadd.f32 %v229_v47, %v116_v46  ;;  %v234_v15 = vadd.f32 %v230_v11, %v117_v10 }
  0x54   :  { %354 = vadd.xlane.f32.xlu0 %v301_v21  ;;  %356 = vadd.xlane.f32.xlu1 %v302_v22 }
  0x58   :  { %326 = vadd.xlane.f32.xlu0 %v243_v23  ;;  %328 = vadd.xlane.f32.xlu1 %v244_v18 }
  0x5c   :  { %330 = vadd.xlane.f32.xlu0 %v245_v32  ;;  %332 = vadd.xlane.f32.xlu1 %v246_v36 }
  0x60   :  { %314 = vadd.xlane.f32.xlu0 %v231_v45  ;;  %316 = vadd.xlane.f32.xlu1 %v232_v39 }
  0x64   :  { %318 = vadd.xlane.f32.xlu0 %v233_v14  ;;  %320 = vadd.xlane.f32.xlu1 %v234_v15 }
  0xcd   :  { %v367_v48 = vpop.xlane.xlu1 %366  ;;  %v363_v49 = vpop.xlane.xlu0 %362 }
  0xce   :  { %v396_v50 = vmax.f32 %v367_v48, 1.0  ;;  %v394_v51 = vmax.f32 %v363_v49, 1.0  ;;  %v530_v52 = vadd.f32 -1.0, %v367_v48  ;;  %v528_v53 = vadd.f32 -1.0, %v363_v49 }
  0xd0   :  { %540 = vrcp.f32 %v396_v50  ;;  %v424_v58 = vmax.f32 %v530_v52, 1.0  ;;  %v422_v60 = vmax.f32 %v528_v53, 1.0 }
  0xd1   :  { %542 = vrcp.f32 %v394_v51  ;;  %v369_v54 = vpop.xlane.xlu1 %368  ;;  %v365_v55 = vpop.xlane.xlu0 %364 }
  0xd2   :  { %v397_v56 = vmax.f32 %v369_v54, 1.0  ;;  %v395_v57 = vmax.f32 %v365_v55, 1.0  ;;  %v531_v59 = vadd.f32 -1.0, %v369_v54  ;;  %v529_v61 = vadd.f32 -1.0, %v365_v55 }
  0xd4   :  { %544 = vrcp.f32 %v397_v56  ;;  %v425_v0 = vmax.f32 %v531_v59, 1.0  ;;  %v423_v1 = vmax.f32 %v529_v61, 1.0 }
  0xd5   :  { %546 = vrcp.f32 %v395_v57  ;;  %v339_v62 = vpop.xlane.xlu0 %338  ;;  %v341_v63 = vpop.xlane.xlu1 %340 }
  0xd6   :  { %548 = vrcp.f32 %v424_v58 }
  0xd7   :  { %550 = vrcp.f32 %v422_v60 }
  0xd8   :  { %552 = vrcp.f32 %v425_v0 }
  0xd9   :  { %v343_v2 = vpop.xlane.xlu0 %342  ;;  %v345_v3 = vpop.xlane.xlu1 %344  ;;  %554 = vrcp.f32 %v423_v1 }
  0xda   :  { %v541_v4 = vpop.eup %540 }
  0xdb   :  { %v543_v5 = vpop.eup %542  ;;  %v403_v6 = vmul.f32 %v541_v4, %v343_v2 }
  0xdc   :  { %v399_v7 = vmul.f32 %v543_v5, %v339_v62 }
  0xdd   :  { %v408_v8 = vmul.f32 %v403_v6, %v367_v48  ;;  %v351_v9 = vpop.xlane.xlu0 %350  ;;  %v353_v21 = vpop.xlane.xlu1 %352 }
  0xde   :  { %v545_v22 = vpop.eup %544  ;;  %v406_v19 = vmul.f32 %v399_v7, %v363_v49 }
  0xdf   :  { %v547_v23 = vpop.eup %546  ;;  %v405_v18 = vmul.f32 %v545_v22, %v345_v3  ;;  %v412_v24 = vmul.f32 %v408_v8, %v403_v6 }
  0xe0   :  { %v401_v25 = vmul.f32 %v547_v23, %v341_v63  ;;  %v410_v26 = vmul.f32 %v406_v19, %v399_v7  ;;  %v549_v30 = vpop.eup %548 }
  0xe1   :  { %v409_v27 = vmul.f32 %v405_v18, %v369_v54  ;;  %v355_v28 = vpop.xlane.xlu0 %354  ;;  %v357_v29 = vpop.xlane.xlu1 %356 }
  0xe2   :  { %v407_v33 = vmul.f32 %v401_v25, %v365_v55  ;;  %v414_v34 = vsub.f32 %v351_v9, %v410_v26  ;;  %v416_v35 = vsub.f32 %v355_v28, %v412_v24  ;;  %v551_v12 = vpop.eup %550 }
  0xe3   :  { %v413_v13 = vmul.f32 %v409_v27, %v405_v18  ;;  %v553_v40 = vpop.eup %552 }
  0xe4   :  { %v427_v16 = vmul.f32 %v551_v12, %v414_v34  ;;  %v411_v17 = vmul.f32 %v407_v33, %v401_v25  ;;  %v431_v32 = vmul.f32 %v549_v30, %v416_v35  ;;  %v555_v43 = vpop.eup %554 }
  0xe5   :  { %v417_v36 = vsub.f32 %v357_v29, %v413_v13  ;;  %v327_v37 = vpop.xlane.xlu0 %326  ;;  %v329_v31 = vpop.xlane.xlu1 %328 }
  0xe6   :  { %v434_v41 = vmax.f32 %v427_v16, 1e-30  ;;  %v415_v42 = vsub.f32 %v353_v21, %v411_v17  ;;  %v436_v38 = vmax.f32 %v431_v32, 1e-30  ;;  %vm370_vm8 = vcmp.ne.f32.partialorder %v327_v37, 0.0 }
  0xe7   :  { %v433_v44 = vmul.f32 %v553_v40, %v417_v36  ;;  %v524_v45 = vsel %vm370_vm8, 1.0, %v695_v20  ;;  %v382_v39 = vadd.f32 1e-06, %v327_v37  ;;  %vm371_vm9 = vcmp.ne.f32.partialorder %v329_v31, 0.0 }
  0xe8   :  { %556 = vrcp.f32 %v434_v41  ;;  %v429_v46 = vmul.f32 %v555_v43, %v415_v42  ;;  %v525_v47 = vsel %vm371_vm9, 1.0, %v695_v20  ;;  %v383_v11 = vadd.f32 1e-06, %v329_v31 }
  0xe9   :  { %558 = vrcp.f32 %v436_v38  ;;  %v437_v10 = vmax.f32 %v433_v44, 1e-30  ;;  %v331_v14 = vpop.xlane.xlu0 %330  ;;  %v333_v15 = vpop.xlane.xlu1 %332  ;;  %v475_v49 = vadd.f32 %v525_v47, %v524_v45  ;;  %vm438_vm12 = vcmp.gt.f32.partialorder %v524_v45, 0.0 }
  0xea   :  { %v435_v48 = vmax.f32 %v429_v46, 1e-30  ;;  %560 = vrcp.f32 %v382_v39  ;;  %vm372_vm10 = vcmp.ne.f32.partialorder %v331_v14, 0.0  ;;  %v384_v51 = vadd.f32 1e-06, %v331_v14 }
  0xeb   :  { %562 = vrcp.f32 %v437_v10  ;;  %v526_v50 = vsel %vm372_vm10, 1.0, %v695_v20  ;;  %vm373_vm11 = vcmp.ne.f32.partialorder %v333_v15, 0.0  ;;  %v385_v54 = vadd.f32 1e-06, %v333_v15 }
  0xec   :  { %564 = vrcp.f32 %v435_v48  ;;  %v476_v52 = vadd.f32 %v526_v50, %v475_v49  ;;  %v527_v53 = vsel %vm373_vm11, 1.0, %v695_v20  ;;  %vm439_vm13 = vcmp.gt.f32.partialorder %v525_v47, 0.0 }
  0xed   :  { %566 = vrcp.f32 %v383_v11  ;;  %v315_v57 = vpop.xlane.xlu0 %314  ;;  %v317_v62 = vpop.xlane.xlu1 %316  ;;  %vm440_vm14 = vcmp.gt.f32.partialorder %v526_v50, 0.0  ;;  %vm441_vm15 = vcmp.gt.f32.partialorder %v527_v53, 0.0 }
  0xee   :  { %568 = vrcp.f32 %v384_v51  ;;  %v477_v55 = vadd.f32 %v527_v53, %v476_v52 }
  0xef   :  { %570 = vrcp.f32 %v385_v54 }
  0xf0   :  { %v478_v56 = vrot.slane %v477_v55, 4 }
  0xf1   :  { %v319_v9 = vpop.xlane.xlu0 %318  ;;  %v321_v26 = vpop.xlane.xlu1 %320 }
  0xf2   :  { %v557_v58 = vpop.eup %556  ;;  %v479_v59 = vadd.f32 %v478_v56, %v477_v55 }
  0xf3   :  { %v559_v60 = vpop.eup %558  ;;  %v450_v61 = vmax.f32 %v557_v58, 0.3 }
  0xf4   :  { %v561_v63 = vpop.eup %560  ;;  %v452_v0 = vmax.f32 %v559_v60, 0.3  ;;  %v480_v1 = vrot.slane %v479_v59, 2 }
  0xf5   :  { %v563_v2 = vpop.eup %562  ;;  %v454_v3 = vmin.f32 %v450_v61, 2.0  ;;  %v387_v22 = vmul.f32 %v561_v63, %v315_v57 }
  0xf6   :  { %v565_v4 = vpop.eup %564  ;;  %v453_v5 = vmax.f32 %v563_v2, 0.3  ;;  %v481_v20 = vadd.f32 %v480_v1, %v479_v59  ;;  %v456_v8 = vmin.f32 %v452_v0, 2.0 }
  0xf7   :  { %v567_v6 = vpop.eup %566  ;;  %v451_v7 = vmax.f32 %v565_v4, 0.3  ;;  %v458_v18 = vsel %vm438_vm12, %v454_v3, 0.0 }
  0xf8   :  { %v569_v21 = vpop.eup %568  ;;  %v389_v19 = vmul.f32 %v567_v6, %v317_v62  ;;  %v457_v25 = vmin.f32 %v453_v5, 2.0  ;;  %v482_v27 = vrot.slane %v481_v20, 1  ;;  %v460_v30 = vsel %vm440_vm14, %v456_v8, 0.0 }
  0xf9   :  { %v571_v23 = vpop.eup %570  ;;  %v455_v24 = vmin.f32 %v451_v7, 2.0  ;;  %v391_v28 = vmul.f32 %v569_v21, %v319_v9  ;;  %v462_v34 = vmul.f32 %v458_v18, %v387_v22 }
  0xfa   :  { %v483_v33 = vadd.f32 %v482_v27, %v481_v20  ;;  %v393_v12 = vmul.f32 %v571_v23, %v321_v26  ;;  %v461_v13 = vsel %vm441_vm15, %v457_v25, 0.0 }
  0xfb   :  { %v459_v29 = vsel %vm439_vm13, %v455_v24, 0.0  ;;  %v464_v17 = vmul.f32 %v460_v30, %v391_v28 }
  0xfc   :  { %v463_v35 = vmul.f32 %v459_v29, %v389_v19  ;;  %485 = vst [vmem:[#allocation14] sm:$0xff] %v483_v33 }
  0xfe   :  { %v466_v16 = vadd.f32 %v463_v35, %v462_v34 }
  0xff   :  { %649 = shalt.err (!%p646_p0)
}
 0x100   :  { %s650_s29 = scalar_lea.hbm %s864_s4, 128 }
 0x101   :  { %p651_p1 = scmp.ne.s32.totalorder %s864_s4, %s650_s29  ;;  %p654_p2 = scmp.lt.u32.totalorder %s650_s29, %s864_s4 }
 0x103   :  { %p656_p3 = pnand %p654_p2, %p651_p1 }
 0x105   :  { %659 = shalt.err (!%p656_p3)
}
 0x106   :  { %505 = dma.vmem_to_hbm [thread:$0]  %s503_s25, 128, %s864_s4, [#allocation15]   ;;  %v467_v32 = vadd.f32 %v466_v16, %v464_v17  ;;  %v465_v36 = vmul.f32 %v461_v13, %v393_v12 }
 0x107   :  { %s697_s10 = smov [#allocation13]  }
 0x108   :  { %v468_v37 = vadd.f32 %v467_v32, %v465_v36  ;;  %s492_s11 = sshll.u32 %s697_s10, 4  ;;  %s493_s11 = int_to_ptr.vmem [resolvable:$true] %s492_s11 }
 0x109   :  { %s660_s12 = scalar_lea.vmem %s493_s11, 128  ;;  %p665_p5 = scmp.lt.s32.totalorder %s493_s11, %s493_s11 }
 0x10a   :  { %v469_v31 = vrot.slane %v468_v37, 4  ;;  %p661_p4 = scmp.ne.s32.totalorder %s493_s11, %s660_s12  ;;  %p666_p6 = scmp.lt.s32.totalorder %s660_s12, %s660_s12 }
 0x10c   :  { %v470_v40 = vadd.f32 %v469_v31, %v468_v37  ;;  %p667_p7 = por %p666_p6, %p665_p5 }
 0x10e   :  { %v471_v41 = vrot.slane %v470_v40, 2  ;;  %p668_p8 = pnand %p667_p7, %p661_p4 }
 0x110   :  { %v472_v42 = vadd.f32 %v471_v41, %v470_v40 }
 0x112   :  { %v473_v38 = vrot.slane %v472_v42, 1 }
 0x114   :  { %v474_v43 = vadd.f32 %v473_v38, %v472_v42 }
 0x116   :  { %484 = vst [vmem:[#allocation13] sm:$0xff] %v474_v43 }
 0x117   :  { %671 = shalt.err (!%p668_p8)
}
 0x118   :  { %s672_s13 = scalar_lea.hbm %s863_s3, 128 }
 0x119   :  { %p673_p9 = scmp.ne.s32.totalorder %s863_s3, %s672_s13  ;;  %p676_p10 = scmp.lt.u32.totalorder %s672_s13, %s863_s3 }
 0x11b   :  { %p678_p11 = pnand %p676_p10, %p673_p9 }
 0x11d   :  { %681 = shalt.err (!%p678_p11)
}
 0x11e   :  { %495 = dma.vmem_to_hbm [thread:$0]  %s493_s11, 128, %s863_s3, [#allocation9]  }
 0x11f   :  { %686 = dma.done.wait [#allocation9], 128  }
 0x120   :  { %687 = vsyncadd [#allocation9], 4294967168 }
 0x121   :  { %688 = dma.done.wait [#allocation15], 128  }
 0x122   :  { %689 = vsyncadd [#allocation15], 4294967168 }
 0x123   :  { %512 = vsyncpa [#allocation8], 1 }
 0x124   :  { %513 = vsyncpa [#allocation11], 1 }
 0x125   :  { %514 = vsyncpa [#allocation9], 1 }
 0x126   :  { %515 = vsyncpa [#allocation15], 1 }

</bundles_post_ra>
